<compile_context>
chip_gen: v7x
topology: tpu7x:2x2x1
jax: 0.10.0
libtpu: 0.0.40
codegen_flags: <defaults>
</compile_context>

<pallas_src>
import functools

import jax
import jax.numpy as jnp
from jax.experimental import pallas as pl
from jax.experimental.pallas import tpu as pltpu


# ----------------------------- hardware helpers ---------------------------- #
def _round_up(n, m):
    return -(-n // m) * m


def _vmem_limit_bytes():
    """Scoped-VMEM budget: ~3/4 of physical capacity, capped at 96 MiB."""
    cap = 64 * 1024 * 1024                       # conservative default (v7x)
    try:
        info = pltpu.get_tpu_info()
        cap = int(getattr(info, "vmem_capacity_bytes", cap) or cap)
    except Exception:
        pass
    return int(min(cap * 3 // 4, 96 * 1024 * 1024))


def _num_tensorcores_per_device():
    """Rough TensorCores-per-device count (v7x / megacore chips -> 2)."""
    try:
        kind = jax.devices()[0].device_kind.lower()
    except Exception:
        kind = ""
    return 2 if any(tag in kind for tag in ("v7", "v5p", "v4")) else 1


# --------------------- fused tap-gather conv kernel ------------------------ #
def _tap_gather_kernel(x_ref, w_ref, b_ref, o_ref, *, taps, ho, wo):
    """One batch element: accumulate kh*kw per-tap matmuls, add bias, store.

    x_ref: (1, Hp, Wp, C)  padded NHWC image (compute dtype)
    w_ref: (T, C, N)       per-tap fused block-complex weights
    b_ref: (1, N)          fused bias row (f32)
    o_ref: (1, Ho*Wo, N)   output rows (out dtype)
    """
    acc = None
    for t, (ro, co) in enumerate(taps):                 # static, unrolled taps
        win = x_ref[0, ro:ro + ho, co:co + wo, :]       # (Ho, Wo, C) static win
        rows = win.reshape(ho * wo, win.shape[-1])      # layout-trivial merge
        part = jnp.dot(rows, w_ref[t], preferred_element_type=jnp.float32)
        acc = part if acc is None else acc + part
    o_ref[0] = (acc + b_ref[...]).astype(o_ref.dtype)   # f32 epilogue, cast out


def _tap_gather_conv(x_pad_nhwc, w_taps, b_row, *, ho, wo, taps, out_dtype,
                     vmem_limit):
    B, Hp, Wp, C = x_pad_nhwc.shape
    T, _, N = w_taps.shape
    kern = functools.partial(_tap_gather_kernel, taps=taps, ho=ho, wo=wo)
    return pl.pallas_call(
        kern,
        out_shape=jax.ShapeDtypeStruct((B, ho * wo, N), out_dtype),
        grid_spec=pltpu.PrefetchScalarGridSpec(
            num_scalar_prefetch=0,
            grid=(B,),
            in_specs=[
                pl.BlockSpec((1, Hp, Wp, C), lambda b: (b, 0, 0, 0)),  # image
                pl.BlockSpec((T, C, N), lambda b: (0, 0, 0)),          # weights
                pl.BlockSpec((1, N), lambda b: (0, 0)),                # bias
            ],
            out_specs=pl.BlockSpec((1, ho * wo, N), lambda b: (b, 0, 0)),
        ),
        compiler_params=pltpu.CompilerParams(
            dimension_semantics=("parallel",),
            vmem_limit_bytes=vmem_limit),
    )(x_pad_nhwc, w_taps, b_row)


# ---------------- im2col + fused block-complex GEMM fallback --------------- #
def _fused_gemm_kernel(x_ref, w_ref, b_ref, o_ref):
    o_ref[...] = (jnp.dot(x_ref[...], w_ref[...],
                          preferred_element_type=jnp.float32)
                  + b_ref[...]).astype(o_ref.dtype)


def _fused_gemm(x_mat, w_mat, b_row, *, out_dtype, vmem_limit, tm_request=1024):
    M, K = x_mat.shape
    _, N = w_mat.shape
    in_b = jnp.dtype(x_mat.dtype).itemsize
    out_b = jnp.dtype(out_dtype).itemsize
    mult = max(8, 32 // in_b)                 # sublane multiple (8 f32, 16 bf16)

    # Size the M tile from the VMEM budget (double-buffered input/output tiles
    # plus the resident weight block), capped at tm_request.
    per_row = 2 * _round_up(K, 128) * in_b + 2 * _round_up(N, 128) * out_b
    w_bytes = _round_up(K, mult) * _round_up(N, 128) * in_b
    tm_cap = max(mult, (vmem_limit // 2 - w_bytes) // max(per_row, 1))
    tm = min(tm_request, tm_cap)
    # Only on multi-TC chips (v7x): make sure the grid has >= 2 steps so both
    # cores get work; on 1-TC v5e/v6e this clamp would only add overhead.
    if _num_tensorcores_per_device() > 1:
        tm = min(tm, max(mult, _round_up(pl.cdiv(M, 2), mult)))
    tm = max(mult, (tm // mult) * mult)
    tm = min(tm, M) if M >= mult else M
    grid = (pl.cdiv(M, tm),)

    return pl.pallas_call(
        _fused_gemm_kernel,
        out_shape=jax.ShapeDtypeStruct((M, N), out_dtype),
        grid_spec=pltpu.PrefetchScalarGridSpec(
            num_scalar_prefetch=0,
            grid=grid,
            in_specs=[
                pl.BlockSpec((tm, K), lambda i: (i, 0)),   # patch rows
                pl.BlockSpec((K, N), lambda i: (0, 0)),    # weights (resident)
                pl.BlockSpec((1, N), lambda i: (0, 0)),    # fused bias
            ],
            out_specs=pl.BlockSpec((tm, N), lambda i: (i, 0)),
        ),
        compiler_params=pltpu.CompilerParams(
            dimension_semantics=("parallel",),
            vmem_limit_bytes=vmem_limit),
    )(x_mat, w_mat, b_row)


def _extract_patches_nhwc(x, kh, kw, sh, sw, dh, dw, ho, wo):
    """im2col on NHWC. Patch feature order = (kh, kw, C)."""
    cols = []
    for i in range(kh):
        for j in range(kw):
            sl = x[:, i * dh: i * dh + (ho - 1) * sh + 1: sh,
                      j * dw: j * dw + (wo - 1) * sw + 1: sw, :]
            cols.append(sl)
    return jnp.concatenate(cols, axis=-1)


# ------------------------------- JAX wrapper -------------------------------- #
def complex_conv2d_forward(x, wr, wi, br, bi, *, kernel_size, stride=(1, 1),
                           padding=(0, 0), dilation=1, groups=1, causal=True,
                           complex_axis=1, compute_dtype=None, out_dtype=None,
                           channels_last=False, impl=None):
    """ComplexConv2d.forward (complex_axis=1, groups=1).

    x : (B, C, H, W) NCHW; wr/wi : (Cout//2, Cin//2, kh, kw); br/bi : (Cout//2,)
    Returns (B, Cout, Ho, Wo) NCHW (== torch.cat([real, imag], dim=1)), or
    (B, Ho, Wo, Cout) if channels_last=True (skips the final layout pass).
    """
    assert groups == 1, "groups > 1 not implemented"            # TODO(synk)
    assert complex_axis == 1, "complex_axis=0 not implemented"  # TODO(synk)

    kh, kw = kernel_size
    sh, sw = stride
    ph, pw = padding
    dh, dw = (dilation, dilation) if isinstance(dilation, int) else dilation

    compute_dtype = compute_dtype or x.dtype
    out_dtype = out_dtype or x.dtype

    # Cast before any wrapper materialization (pads / fallback im2col stay
    # narrow for the bf16 path).
    x = x.astype(compute_dtype)

    # F.pad(inputs, [pw, 0, 0, 0]) if causal else [pw, pw, 0, 0]  (pads W).
    if pw != 0 and causal:
        x = jnp.pad(x, ((0, 0), (0, 0), (0, 0), (pw, 0)))
    else:
        x = jnp.pad(x, ((0, 0), (0, 0), (0, 0), (pw, pw)))
    # nn.Conv2d(padding=[ph, 0]) -> symmetric H padding (both complex halves).
    x = jnp.pad(x, ((0, 0), (0, 0), (ph, ph), (0, 0)))

    B, C, Hp, Wp = x.shape
    Ch = C // 2                         # channels per complex half (real first)
    Co = wr.shape[0]
    N = 2 * Co
    Ho = (Hp - dh * (kh - 1) - 1) // sh + 1
    Wo = (Wp - dw * (kw - 1) - 1) // sw + 1

    # NCHW -> NHWC (channel order stays [real(Ch), imag(Ch)]).
    x_nhwc = jnp.transpose(x, (0, 2, 3, 1))

    # Block-complex fused weights; per-tap feature order [real(Ch), imag(Ch)]:
    #   real-input rows -> [ Wr | Wi ],   imag-input rows -> [ -Wi | Wr ]
    wrt = jnp.transpose(wr, (2, 3, 1, 0)).astype(compute_dtype)   # (kh,kw,Ch,Co)
    wit = jnp.transpose(wi, (2, 3, 1, 0)).astype(compute_dtype)
    w_block = jnp.concatenate(
        [jnp.concatenate([wrt, wit], axis=-1),
         jnp.concatenate([-wit, wrt], axis=-1)], axis=2)          # (kh,kw,C,N)
    # Fused bias: real out += (br - bi), imag out += (br + bi); epilogue in f32.
    b_row = jnp.concatenate([br - bi, br + bi]).reshape(1, N).astype(jnp.float32)

    vmem_limit = _vmem_limit_bytes()
    in_b = jnp.dtype(compute_dtype).itemsize
    out_b = jnp.dtype(out_dtype).itemsize
    sub_mult = max(8, 32 // in_b)

    # ------------------------------ path selection ------------------------- #
    use_gather = (impl != "gemm") and (sh == 1 and sw == 1) \
        and (Wo % sub_mult == 0)
    if use_gather:
        est = (2 * Hp * _round_up(Wp, sub_mult) * _round_up(C, 128) * in_b
               + 2 * _round_up(Ho * Wo, 8) * _round_up(N, 128) * out_b
               + 2 * kh * kw * _round_up(C, sub_mult) * _round_up(N, 128) * in_b
               + 6 * _round_up(Ho * Wo, 8) * _round_up(max(C, N), 128) * 4)
        use_gather = est <= (vmem_limit * 7) // 10
    if impl == "gather" and not use_gather:
        raise ValueError("fused tap-gather path not applicable for this shape")

    if use_gather:
        # Default path: no im2col, the kernel gathers the kh*kw taps itself.
        taps = tuple((i * dh, j * dw) for i in range(kh) for j in range(kw))
        w_taps = w_block.reshape(kh * kw, C, N)
        rows = _tap_gather_conv(x_nhwc, w_taps, b_row, ho=Ho, wo=Wo, taps=taps,
                                out_dtype=out_dtype, vmem_limit=vmem_limit)
        out_nhwc = rows.reshape(B, Ho, Wo, N)
    else:
        # Fallback: wrapper-side im2col + one fused block-complex GEMM.
        patches = _extract_patches_nhwc(x_nhwc, kh, kw, sh, sw, dh, dw, Ho, Wo)
        M = B * Ho * Wo
        K = kh * kw * C
        x_mat = patches.reshape(M, K)
        w_mat = w_block.reshape(K, N)
        Kp = _round_up(K, sub_mult)          # dtype-aware sublane pad only
        if Kp != K:
            x_mat = jnp.pad(x_mat, ((0, 0), (0, Kp - K)))
            w_mat = jnp.pad(w_mat, ((0, Kp - K), (0, 0)))
        rows = _fused_gemm(x_mat, w_mat, b_row, out_dtype=out_dtype,
                           vmem_limit=vmem_limit)
        out_nhwc = rows.reshape(B, Ho, Wo, N)

    if channels_last:
        return out_nhwc                  # [real(Co) | imag(Co)] on last axis
    # NCHW parity with the PyTorch module (extra layout pass done by XLA).
    return jnp.transpose(out_nhwc, (0, 3, 1, 2))


# --------------------------- pure-JAX reference ----------------------------- #
def _ref_conv2d(x_nchw, w, b, stride, dilation):
    out = jax.lax.conv_general_dilated(
        x_nchw, w, window_strides=stride, padding="VALID",
        rhs_dilation=dilation,
        dimension_numbers=("NCHW", "OIHW", "NCHW"))
    return out + b.reshape(1, -1, 1, 1)


def reference_forward(x, wr, wi, br, bi, kernel_size, stride, padding, causal,
                      dilation=(1, 1)):
    ph, pw = padding
    if pw != 0 and causal:
        x = jnp.pad(x, ((0, 0), (0, 0), (0, 0), (pw, 0)))
    else:
        x = jnp.pad(x, ((0, 0), (0, 0), (0, 0), (pw, pw)))
    C = x.shape[1]
    real, imag = x[:, : C // 2], x[:, C // 2:]
    real = jnp.pad(real, ((0, 0), (0, 0), (ph, ph), (0, 0)))
    imag = jnp.pad(imag, ((0, 0), (0, 0), (ph, ph), (0, 0)))
    r2r = _ref_conv2d(real, wr, br, stride, dilation)
    i2i = _ref_conv2d(imag, wi, bi, stride, dilation)
    r2i = _ref_conv2d(real, wi, bi, stride, dilation)
    i2r = _ref_conv2d(imag, wr, br, stride, dilation)
    return jnp.concatenate([r2r - i2i, r2i + i2r], axis=1)


# --------------------------------- main ------------------------------------- #
if __name__ == "__main__":
    key = jax.random.PRNGKey(0)
    B, Cin, H, W = 2, 4, 16, 16
    Cout = 8
    kernel_size = (3, 2)
    stride = (1, 1)
    padding = (1, 1)
    causal = True

    k_x, k_wr, k_wi = jax.random.split(key, 3)
    x = jax.random.normal(k_x, (B, Cin, H, W), dtype=jnp.float32)

    Cin_h, Cout_h = Cin // 2, Cout // 2
    # nn.init.normal_(std=0.05) for weights, constant_(0.) for biases
    wr = 0.05 * jax.random.normal(k_wr, (Cout_h, Cin_h) + kernel_size, jnp.float32)
    wi = 0.05 * jax.random.normal(k_wi, (Cout_h, Cin_h) + kernel_size, jnp.float32)
    br = jnp.zeros((Cout_h,), jnp.float32)
    bi = jnp.zeros((Cout_h,), jnp.float32)

    ref = reference_forward(x, wr, wi, br, bi, kernel_size, stride, padding,
                            causal)
    common = dict(kernel_size=kernel_size, stride=stride, padding=padding,
                  causal=causal)

    # 1) fused tap-gather path, f32 compute / f32 output (tight tolerance).
    fwd_f32 = jax.jit(functools.partial(complex_conv2d_forward, **common))
    out_f32 = jax.block_until_ready(fwd_f32(x, wr, wi, br, bi))
    assert out_f32.shape == ref.shape, (out_f32.shape, ref.shape)
    assert jnp.allclose(out_f32, ref, atol=1e-4, rtol=1e-4), float(
        jnp.max(jnp.abs(out_f32 - ref)))

    # 2) fused tap-gather path, bf16 compute + bf16 output (halved writeback),
    #    f32 MXU accumulation; looser tolerance.
    fwd_bf16 = jax.jit(functools.partial(
        complex_conv2d_forward, compute_dtype=jnp.bfloat16,
        out_dtype=jnp.bfloat16, **common))
    out_bf16 = jax.block_until_ready(fwd_bf16(x, wr, wi, br, bi))
    assert jnp.allclose(out_bf16.astype(jnp.float32), ref,
                        atol=3e-2, rtol=3e-2), float(
        jnp.max(jnp.abs(out_bf16.astype(jnp.float32) - ref)))

    # 3) im2col + fused-GEMM fallback path (coverage for strided / odd shapes).
    fwd_gemm = jax.jit(functools.partial(
        complex_conv2d_forward, impl="gemm", **common))
    out_gemm = jax.block_until_ready(fwd_gemm(x, wr, wi, br, bi))
    assert jnp.allclose(out_gemm, ref, atol=1e-4, rtol=1e-4), float(
        jnp.max(jnp.abs(out_gemm - ref)))

    print("KERNEL_OK")
</pallas_src>

<mosaic_0001>
module attributes {stable_mosaic.version = 11 : i64} {
  func.func @_tap_gather_kernel(%arg0: i32, %arg1: memref<1x18x17x4xf32, #tpu.memory_space<vmem>>, %arg2: memref<6x4x8xf32, #tpu.memory_space<vmem>>, %arg3: memref<1x8xf32, #tpu.memory_space<vmem>>, %arg4: memref<1x256x8xf32, #tpu.memory_space<vmem>>) attributes {dimension_semantics = [#tpu.dimension_semantics<parallel>], iteration_bounds = array<i64: 2>, scalar_prefetch = 0 : i64, scratch_operands = 0 : i64, tpu.core_type = #tpu.core_type<tc>, window_params = [{transform_indices = @transform_0, window_bounds = array<i64: 1, 18, 17, 4>}, {pipeline_mode = #tpu.pipeline_mode<synchronous>, transform_indices = @transform_1, window_bounds = array<i64: 6, 4, 8>}, {pipeline_mode = #tpu.pipeline_mode<synchronous>, transform_indices = @transform_2, window_bounds = array<i64: 1, 8>}, {transform_indices = @transform_3, window_bounds = array<i64: 1, 256, 8>}]} {
    %c0 = arith.constant 0 : index
    %c0_0 = arith.constant 0 : index
    %c0_1 = arith.constant 0 : index
    %c0_2 = arith.constant 0 : index
    %0 = vector.load %arg1[%c0, %c0_0, %c0_1, %c0_2] : memref<1x18x17x4xf32, #tpu.memory_space<vmem>>, vector<1x16x16x4xf32>
    %1 = vector.shape_cast %0 : vector<1x16x16x4xf32> to vector<16x16x4xf32>
    %2 = vector.shape_cast %1 : vector<16x16x4xf32> to vector<256x4xf32>
    %c0_3 = arith.constant 0 : index
    %c0_4 = arith.constant 0 : index
    %c0_5 = arith.constant 0 : index
    %3 = vector.load %arg2[%c0_3, %c0_4, %c0_5] : memref<6x4x8xf32, #tpu.memory_space<vmem>>, vector<1x4x8xf32>
    %4 = vector.shape_cast %3 : vector<1x4x8xf32> to vector<4x8xf32>
    %cst = arith.constant dense<0.000000e+00> : vector<256x8xf32>
    %5 = tpu.matmul %2, %4, %cst {dimension_numbers = #tpu.dot_dimension_numbers<[1], [0], [0], [1], [0, 0, 1, 1], [], []>} : vector<256x4xf32>, vector<4x8xf32>, vector<256x8xf32> -> vector<256x8xf32>
    %c0_6 = arith.constant 0 : index
    %c0_7 = arith.constant 0 : index
    %c1 = arith.constant 1 : index
    %c0_8 = arith.constant 0 : index
    %6 = vector.load %arg1[%c0_6, %c0_7, %c1, %c0_8] : memref<1x18x17x4xf32, #tpu.memory_space<vmem>>, vector<1x16x16x4xf32>
    %7 = vector.shape_cast %6 : vector<1x16x16x4xf32> to vector<16x16x4xf32>
    %8 = vector.shape_cast %7 : vector<16x16x4xf32> to vector<256x4xf32>
    %c1_9 = arith.constant 1 : index
    %c0_10 = arith.constant 0 : index
    %c0_11 = arith.constant 0 : index
    %9 = vector.load %arg2[%c1_9, %c0_10, %c0_11] : memref<6x4x8xf32, #tpu.memory_space<vmem>>, vector<1x4x8xf32>
    %10 = vector.shape_cast %9 : vector<1x4x8xf32> to vector<4x8xf32>
    %cst_12 = arith.constant dense<0.000000e+00> : vector<256x8xf32>
    %11 = tpu.matmul %8, %10, %cst_12 {dimension_numbers = #tpu.dot_dimension_numbers<[1], [0], [0], [1], [0, 0, 1, 1], [], []>} : vector<256x4xf32>, vector<4x8xf32>, vector<256x8xf32> -> vector<256x8xf32>
    %12 = arith.addf %5, %11 : vector<256x8xf32>
    %c0_13 = arith.constant 0 : index
    %c1_14 = arith.constant 1 : index
    %c0_15 = arith.constant 0 : index
    %c0_16 = arith.constant 0 : index
    %13 = vector.load %arg1[%c0_13, %c1_14, %c0_15, %c0_16] : memref<1x18x17x4xf32, #tpu.memory_space<vmem>>, vector<1x16x16x4xf32>
    %14 = vector.shape_cast %13 : vector<1x16x16x4xf32> to vector<16x16x4xf32>
    %15 = vector.shape_cast %14 : vector<16x16x4xf32> to vector<256x4xf32>
    %c2 = arith.constant 2 : index
    %c0_17 = arith.constant 0 : index
    %c0_18 = arith.constant 0 : index
    %16 = vector.load %arg2[%c2, %c0_17, %c0_18] : memref<6x4x8xf32, #tpu.memory_space<vmem>>, vector<1x4x8xf32>
    %17 = vector.shape_cast %16 : vector<1x4x8xf32> to vector<4x8xf32>
    %cst_19 = arith.constant dense<0.000000e+00> : vector<256x8xf32>
    %18 = tpu.matmul %15, %17, %cst_19 {dimension_numbers = #tpu.dot_dimension_numbers<[1], [0], [0], [1], [0, 0, 1, 1], [], []>} : vector<256x4xf32>, vector<4x8xf32>, vector<256x8xf32> -> vector<256x8xf32>
    %19 = arith.addf %12, %18 : vector<256x8xf32>
    %c0_20 = arith.constant 0 : index
    %c1_21 = arith.constant 1 : index
    %c1_22 = arith.constant 1 : index
    %c0_23 = arith.constant 0 : index
    %20 = vector.load %arg1[%c0_20, %c1_21, %c1_22, %c0_23] : memref<1x18x17x4xf32, #tpu.memory_space<vmem>>, vector<1x16x16x4xf32>
    %21 = vector.shape_cast %20 : vector<1x16x16x4xf32> to vector<16x16x4xf32>
    %22 = vector.shape_cast %21 : vector<16x16x4xf32> to vector<256x4xf32>
    %c3 = arith.constant 3 : index
    %c0_24 = arith.constant 0 : index
    %c0_25 = arith.constant 0 : index
    %23 = vector.load %arg2[%c3, %c0_24, %c0_25] : memref<6x4x8xf32, #tpu.memory_space<vmem>>, vector<1x4x8xf32>
    %24 = vector.shape_cast %23 : vector<1x4x8xf32> to vector<4x8xf32>
    %cst_26 = arith.constant dense<0.000000e+00> : vector<256x8xf32>
    %25 = tpu.matmul %22, %24, %cst_26 {dimension_numbers = #tpu.dot_dimension_numbers<[1], [0], [0], [1], [0, 0, 1, 1], [], []>} : vector<256x4xf32>, vector<4x8xf32>, vector<256x8xf32> -> vector<256x8xf32>
    %26 = arith.addf %19, %25 : vector<256x8xf32>
    %c0_27 = arith.constant 0 : index
    %c2_28 = arith.constant 2 : index
    %c0_29 = arith.constant 0 : index
    %c0_30 = arith.constant 0 : index
    %27 = vector.load %arg1[%c0_27, %c2_28, %c0_29, %c0_30] : memref<1x18x17x4xf32, #tpu.memory_space<vmem>>, vector<1x16x16x4xf32>
    %28 = vector.shape_cast %27 : vector<1x16x16x4xf32> to vector<16x16x4xf32>
    %29 = vector.shape_cast %28 : vector<16x16x4xf32> to vector<256x4xf32>
    %c4 = arith.constant 4 : index
    %c0_31 = arith.constant 0 : index
    %c0_32 = arith.constant 0 : index
    %30 = vector.load %arg2[%c4, %c0_31, %c0_32] : memref<6x4x8xf32, #tpu.memory_space<vmem>>, vector<1x4x8xf32>
    %31 = vector.shape_cast %30 : vector<1x4x8xf32> to vector<4x8xf32>
    %cst_33 = arith.constant dense<0.000000e+00> : vector<256x8xf32>
    %32 = tpu.matmul %29, %31, %cst_33 {dimension_numbers = #tpu.dot_dimension_numbers<[1], [0], [0], [1], [0, 0, 1, 1], [], []>} : vector<256x4xf32>, vector<4x8xf32>, vector<256x8xf32> -> vector<256x8xf32>
    %33 = arith.addf %26, %32 : vector<256x8xf32>
    %c0_34 = arith.constant 0 : index
    %c2_35 = arith.constant 2 : index
    %c1_36 = arith.constant 1 : index
    %c0_37 = arith.constant 0 : index
    %34 = vector.load %arg1[%c0_34, %c2_35, %c1_36, %c0_37] : memref<1x18x17x4xf32, #tpu.memory_space<vmem>>, vector<1x16x16x4xf32>
    %35 = vector.shape_cast %34 : vector<1x16x16x4xf32> to vector<16x16x4xf32>
    %36 = vector.shape_cast %35 : vector<16x16x4xf32> to vector<256x4xf32>
    %c5 = arith.constant 5 : index
    %c0_38 = arith.constant 0 : index
    %c0_39 = arith.constant 0 : index
    %37 = vector.load %arg2[%c5, %c0_38, %c0_39] : memref<6x4x8xf32, #tpu.memory_space<vmem>>, vector<1x4x8xf32>
    %38 = vector.shape_cast %37 : vector<1x4x8xf32> to vector<4x8xf32>
    %cst_40 = arith.constant dense<0.000000e+00> : vector<256x8xf32>
    %39 = tpu.matmul %36, %38, %cst_40 {dimension_numbers = #tpu.dot_dimension_numbers<[1], [0], [0], [1], [0, 0, 1, 1], [], []>} : vector<256x4xf32>, vector<4x8xf32>, vector<256x8xf32> -> vector<256x8xf32>
    %40 = arith.addf %33, %39 : vector<256x8xf32>
    %c0_41 = arith.constant 0 : index
    %c0_42 = arith.constant 0 : index
    %41 = vector.load %arg3[%c0_41, %c0_42] : memref<1x8xf32, #tpu.memory_space<vmem>>, vector<1x8xf32>
    %42 = vector.broadcast %41 : vector<1x8xf32> to vector<256x8xf32>
    %43 = arith.addf %40, %42 : vector<256x8xf32>
    %c0_43 = arith.constant 0 : index
    %c0_44 = arith.constant 0 : index
    %c0_45 = arith.constant 0 : index
    %44 = vector.load %arg4[%c0_43, %c0_44, %c0_45] : memref<1x256x8xf32, #tpu.memory_space<vmem>>, vector<1x256x8xf32>
    %45 = vector.shape_cast %44 : vector<1x256x8xf32> to vector<256x8xf32>
    %46 = vector.shape_cast %43 : vector<256x8xf32> to vector<1x256x8xf32>
    tpu.vector_store %arg4[%c0_43, %c0_44, %c0_45], %46 {strides = array<i32>} : memref<1x256x8xf32, #tpu.memory_space<vmem>>, vector<1x256x8xf32>,
    return
  }
  func.func @transform_0(%arg0: i32) -> (i32, i32, i32, i32) {
    %c0_i32 = arith.constant 0 : i32
    %c0_i32_0 = arith.constant 0 : i32
    %c0_i32_1 = arith.constant 0 : i32
    %c0_i32_2 = arith.constant 0 : i32
    return %arg0, %c0_i32, %c0_i32_0, %c0_i32_1 : i32, i32, i32, i32
  }
  func.func @transform_1(%arg0: i32) -> (i32, i32, i32) {
    %c0_i32 = arith.constant 0 : i32
    %c0_i32_0 = arith.constant 0 : i32
    %c0_i32_1 = arith.constant 0 : i32
    %c0_i32_2 = arith.constant 0 : i32
    return %c0_i32, %c0_i32_0, %c0_i32_1 : i32, i32, i32
  }
  func.func @transform_2(%arg0: i32) -> (i32, i32) {
    %c0_i32 = arith.constant 0 : i32
    %c0_i32_0 = arith.constant 0 : i32
    %c0_i32_1 = arith.constant 0 : i32
    return %c0_i32, %c0_i32_0 : i32, i32
  }
  func.func @transform_3(%arg0: i32) -> (i32, i32, i32) {
    %c0_i32 = arith.constant 0 : i32
    %c0_i32_0 = arith.constant 0 : i32
    %c0_i32_1 = arith.constant 0 : i32
    return %arg0, %c0_i32, %c0_i32_0 : i32, i32, i32
  }
}

</mosaic_0001>

<bundles_post_ra>
// kernel: complex_conv2d_forward.1
= control target key start
LH: loop header
LB: loop body
LE: loop exit
PB: predicated region body
PF: predicated region fallthrough
CT: control target
= control target key end

     0   :  { %s3615_s12 = smov 0   ;;  %s4347_s0 = inlined_call_operand.vmem [shape: f32[2,18,17,4], index: 0, kind: input, shape index: {}]   ;;  %s4348_s1 = inlined_call_operand.vmem [shape: f32[6,4,8], index: 1, kind: input, shape index: {}]   ;;  %s4349_s2 = inlined_call_operand.vmem [shape: f32[1,8], index: 2, kind: input, shape index: {}]   ;;  %s4350_s3 = inlined_call_operand.vmem [shape: f32[2,256,8], index: 3, kind: output, shape index: {}]  }
   0x1 LB: > { %s2577_s13 = sadd.s32 4294967295, %s3593_s12   ;;  %p2581_p0 = scmp.ge.s32.totalorder %s3593_s12, 1  ;;  %s3593_s12 = sphi %s3615_s12, %s13_s12  }
   0x2   : > { %p137_p1 = scmp.lt.s32.totalorder %s3593_s12, 3 }
   0x4   : > { %p138_p2 = pnand %p2581_p0, %p137_p1 }
   0x5   : > { %v2585_v0 = vld [vmem:[%s4348_s1 + $0x4] sm:$0xf] (!%p138_p2)  ;;  %vm335_vm0 = vcmask (!%p138_p2), 1043456   ;;  %v2750_v1 = vld [vmem:[%s4348_s1 + $0xc] sm:$0xf] (!%p138_p2)  ;;  %p161_p3 = scmp.lt.s32.totalorder (!%p138_p2), %s2577_s13, 1 }
   0x6   : > { %141 = sbr.rel (%p138_p2) target bundleno = 425 (0x1a9), region = 32  ;;  %3118 = vmatprep.subr.msk.mxu1 (!%p138_p2), %vm335_vm0, %v2585_v0  ;;  %3268 = vmatprep.subr.msk.mxu0 (!%p138_p2), %vm335_vm0, %v2750_v1  ;;  %v203_v2 = vld [vmem:[%s4348_s1] sm:$0xf] (!%p138_p2)  ;;  %v2816_v3 = vld [vmem:[%s4348_s1 + $0x10] sm:$0xf] (!%p138_p2)  ;;  %vm238_vm1 = vcmask (!%p138_p2), 31744  }
   0x7   : > { %3119 = vmatpush3.msk.msra.mxu1 (!%p138_p2), %vm335_vm0, %v2585_v0  ;;  %3269 = vmatpush3.msk.msra.mxu0 (!%p138_p2), %vm335_vm0, %v2750_v1  ;;  %v3663_v9 = vld [vmem:[%s4348_s1 + $0x8] sm:$0xf] (!%p138_p2)  ;;  %v3668_v10 = vld [vmem:[%s4348_s1 + $0x14] sm:$0xf] (!%p138_p2)  ;;  %vm2489_vm2 = vcmask (!%p138_p2), 64512  }
   0x8   : > { %3168 = vmatprep.subr.msk.mxu1 (!%p138_p2), %vm335_vm0, %v203_v2  ;;  %3318 = vmatprep.subr.msk.mxu0 (!%p138_p2), %vm335_vm0, %v2816_v3 }
   0xd   : > { %s4352_s13 = smov (!%p161_p3, %s2577_s13), 1 }
   0xe   : > { %s3578_s22 = smul.u32 432, %s4352_s13  ;;  %s2919_s30 = sshll.u32 %s4352_s13, 8 }
   0xf   : > { %s4246_s8 = scalar_lea.vmem %s4350_s3, %s2919_s30 }
  0x10   : > { %s3647_s25 = scalar_lea.vmem %s4347_s0, %s3578_s22 }
  0x11   : > { %v204_v4 = vld [vmem:[%s3647_s25 + $0x1] sm:$0xff]  ;;  %v2718_v5 = vld [vmem:[%s3647_s25 + $0x19] sm:$0xff]  ;;  %v205_v6 = vld [vmem:[%s3647_s25 + $0x9] sm:$0xff] }
  0x12   : > { %3120 = vmatprep.mubr.msk.f32.mxu1 %vm238_vm1, %v204_v4  ;;  %3270 = vmatprep.mubr.msk.f32.mxu0 %vm238_vm1, %v2718_v5  ;;  %v2719_v7 = vld [vmem:[%s3647_s25 + $0x21] sm:$0xff]  ;;  %v3656_v8 = vld [vmem:[%s3647_s25 + $0x31] sm:$0xff]  ;;  %v3673_v11 = vld [vmem:[%s3647_s25 + $0x39] sm:$0xff] }
  0x13   : > { %3121 = vmatmul.mubr.msk.f32.vlgmr.msra.gmra.mrb[0].mxu1 %vm238_vm1, %v205_v6  ;;  %3271 = vmatmul.mubr.msk.f32.vlgmr.msra.gmra.mrb[0].mxu0 %vm238_vm1, %v2719_v7  ;;  %v3679_v12 = vld [vmem:[%s3647_s25 + $0x49] sm:$0xff]  ;;  %v3693_v13 = vld [vmem:[%s3647_s25 + $0x51] sm:$0xff]  ;;  %v3696_v14 = vld [vmem:[%s3647_s25 + $0x61] sm:$0xff] }
  0x14   : > { %3169 = vmatpush3.msk.msra.mxu1 %vm335_vm0, %v203_v2  ;;  %3319 = vmatpush3.msk.msra.mxu0 %vm335_vm0, %v2816_v3  ;;  %v3707_v15 = vld [vmem:[%s3647_s25 + $0x69] sm:$0xff]  ;;  %v3710_v16 = vld [vmem:[%s3647_s25 + $0x79] sm:$0xff]  ;;  %v3721_v17 = vld [vmem:[%s3647_s25 + $0x81] sm:$0xff] }
  0x15   : > { %3123 = vmatprep.mubr.msk.f32.mxu1 %vm238_vm1, %v2718_v5  ;;  %3273 = vmatprep.mubr.msk.f32.mxu0 %vm238_vm1, %v3656_v8  ;;  %v3724_v18 = vld [vmem:[%s3647_s25 + $0x91] sm:$0xff]  ;;  %v3735_v19 = vld [vmem:[%s3647_s25 + $0x99] sm:$0xff]  ;;  %v3738_v20 = vld [vmem:[%s3647_s25 + $0xa9] sm:$0xff] }
  0x16   : > { %3218 = vmatprep.subr.msk.mxu1 %vm335_vm0, %v3663_v9  ;;  %3368 = vmatprep.subr.msk.mxu0 %vm335_vm0, %v3668_v10  ;;  %v3749_v21 = vld [vmem:[%s3647_s25 + $0xb1] sm:$0xff]  ;;  %v3752_v22 = vld [vmem:[%s3647_s25 + $0xc1] sm:$0xff]  ;;  %v3763_v23 = vld [vmem:[%s3647_s25 + $0xc9] sm:$0xff] }
  0x17   : > { %3124 = vmatmul.mubr.msk.f32.gmra.mrb[2].mxu1 %vm238_vm1, %v2719_v7  ;;  %3274 = vmatmul.mubr.msk.f32.gmra.mrb[2].mxu0 %vm238_vm1, %v3673_v11  ;;  %v3766_v24 = vld [vmem:[%s3647_s25 + $0xd9] sm:$0xff]  ;;  %v3777_v25 = vld [vmem:[%s3647_s25 + $0xe1] sm:$0xff]  ;;  %v3780_v26 = vld [vmem:[%s3647_s25 + $0xf1] sm:$0xff] }
  0x18   : > { %3126 = vmatprep.mubr.msk.f32.mxu1 %vm238_vm1, %v3656_v8  ;;  %3276 = vmatprep.mubr.msk.f32.mxu0 %vm238_vm1, %v3679_v12  ;;  %v3791_v27 = vld [vmem:[%s3647_s25 + $0xf9] sm:$0xff]  ;;  %v3794_v28 = vld [vmem:[%s3647_s25 + $0x109] sm:$0xff]  ;;  %v3805_v29 = vld [vmem:[%s3647_s25 + $0x111] sm:$0xff] }
  0x19   : > { %v3808_v30 = vld [vmem:[%s3647_s25 + $0x121] sm:$0xff]  ;;  %v3819_v31 = vld [vmem:[%s3647_s25 + $0x129] sm:$0xff]  ;;  %v3822_v32 = vld [vmem:[%s3647_s25 + $0x139] sm:$0xff] }
  0x1a   : > { %v3833_v33 = vld [vmem:[%s3647_s25 + $0x141] sm:$0xff]  ;;  %v3836_v34 = vld [vmem:[%s3647_s25 + $0x151] sm:$0xff]  ;;  %v3847_v35 = vld [vmem:[%s3647_s25 + $0x159] sm:$0xff] }
  0x1b   : > { %3127 = vmatmul.mubr.msk.f32.gmra.mrb[4].mxu1 %vm238_vm1, %v3673_v11  ;;  %3277 = vmatmul.mubr.msk.f32.gmra.mrb[4].mxu0 %vm238_vm1, %v3693_v13  ;;  %v3850_v36 = vld [vmem:[%s3647_s25 + $0x169] sm:$0xff]  ;;  %v3861_v37 = vld [vmem:[%s3647_s25 + $0x171] sm:$0xff]  ;;  %v3864_v38 = vld [vmem:[%s3647_s25 + $0x181] sm:$0xff] }
  0x1c   : > { %3129 = vmatprep.mubr.msk.f32.mxu1 %vm238_vm1, %v3679_v12  ;;  %3279 = vmatprep.mubr.msk.f32.mxu0 %vm238_vm1, %v3696_v14  ;;  %v3875_v39 = vld [vmem:[%s3647_s25 + $0x189] sm:$0xff]  ;;  %v171_v40 = vld [vmem:[%s3647_s25] sm:$0xff]  ;;  %v3890_v43 = vld [vmem:[%s3647_s25 + $0x38] sm:$0xff] }
  0x1d   : > { %v3879_v41 = vld [vmem:[%s3647_s25 + $0x30] sm:$0xff]  ;;  %v172_v42 = vld [vmem:[%s3647_s25 + $0x8] sm:$0xff]  ;;  %v3893_v44 = vld [vmem:[%s3647_s25 + $0x18] sm:$0xff] }
  0x1e   : > { %v3896_v45 = vld [vmem:[%s3647_s25 + $0x48] sm:$0xff]  ;;  %v3906_v46 = vld [vmem:[%s3647_s25 + $0x20] sm:$0xff]  ;;  %v3909_v47 = vld [vmem:[%s3647_s25 + $0x50] sm:$0xff] }
  0x1f   : > { %3130 = vmatmul.mubr.msk.f32.gmra.mrb[6].mxu1 %vm238_vm1, %v3693_v13  ;;  %3280 = vmatmul.mubr.msk.f32.gmra.mrb[6].mxu0 %vm238_vm1, %v3707_v15  ;;  %v3916_v48 = vld [vmem:[%s3647_s25 + $0x60] sm:$0xff]  ;;  %v3927_v49 = vld [vmem:[%s3647_s25 + $0x68] sm:$0xff]  ;;  %v3930_v50 = vld [vmem:[%s3647_s25 + $0x78] sm:$0xff] }
  0x20   : > { %3132 = vmatprep.mubr.msk.f32.mxu1 %vm238_vm1, %v3696_v14  ;;  %3282 = vmatprep.mubr.msk.f32.mxu0 %vm238_vm1, %v3710_v16  ;;  %v3941_v51 = vld [vmem:[%s3647_s25 + $0x80] sm:$0xff]  ;;  %v3944_v52 = vld [vmem:[%s3647_s25 + $0x90] sm:$0xff]  ;;  %v3955_v53 = vld [vmem:[%s3647_s25 + $0x98] sm:$0xff] }
  0x21   : > { %v3958_v54 = vld [vmem:[%s3647_s25 + $0xa8] sm:$0xff]  ;;  %v3969_v55 = vld [vmem:[%s3647_s25 + $0xb0] sm:$0xff]  ;;  %v3972_v56 = vld [vmem:[%s3647_s25 + $0xc0] sm:$0xff] }
  0x22   : > { %v3983_v57 = vld [vmem:[%s3647_s25 + $0xc8] sm:$0xff]  ;;  %v3986_v58 = vld [vmem:[%s3647_s25 + $0xd8] sm:$0xff]  ;;  %v3997_v59 = vld [vmem:[%s3647_s25 + $0xe0] sm:$0xff] }
  0x23   : > { %3133 = vmatmul.mubr.msk.f32.gmra.mrb[8].mxu1 %vm238_vm1, %v3707_v15  ;;  %3283 = vmatmul.mubr.msk.f32.gmra.mrb[8].mxu0 %vm238_vm1, %v3721_v17  ;;  %v4000_v60 = vld [vmem:[%s3647_s25 + $0xf0] sm:$0xff]  ;;  %v4011_v61 = vld [vmem:[%s3647_s25 + $0xf8] sm:$0xff]  ;;  %v4014_v62 = vld [vmem:[%s3647_s25 + $0x108] sm:$0xff] }
  0x24   : > { %3135 = vmatprep.mubr.msk.f32.mxu1 %vm238_vm1, %v3710_v16  ;;  %3285 = vmatprep.mubr.msk.f32.mxu0 %vm238_vm1, %v3724_v18  ;;  %v4025_v63 = vld [vmem:[%s3647_s25 + $0x110] sm:$0xff]  ;;  %v4028_v0 = vld [vmem:[%s3647_s25 + $0x120] sm:$0xff]  ;;  %v4039_v1 = vld [vmem:[%s3647_s25 + $0x128] sm:$0xff] }
  0x25   : > { %v4042_v2 = vld [vmem:[%s3647_s25 + $0x138] sm:$0xff]  ;;  %v4053_v3 = vld [vmem:[%s3647_s25 + $0x140] sm:$0xff]  ;;  %v4056_v4 = vld [vmem:[%s3647_s25 + $0x150] sm:$0xff] }
  0x26   : > { %v4067_v5 = vld [vmem:[%s3647_s25 + $0x158] sm:$0xff]  ;;  %v4070_v6 = vld [vmem:[%s3647_s25 + $0x168] sm:$0xff]  ;;  %v4081_v7 = vld [vmem:[%s3647_s25 + $0x170] sm:$0xff] }
  0x27   : > { %3136 = vmatmul.mubr.msk.f32.gmra.mrb[10].mxu1 %vm238_vm1, %v3721_v17  ;;  %3286 = vmatmul.mubr.msk.f32.gmra.mrb[10].mxu0 %vm238_vm1, %v3735_v19 }
  0x28   : > { %3138 = vmatprep.mubr.msk.f32.mxu1 %vm238_vm1, %v3724_v18  ;;  %3288 = vmatprep.mubr.msk.f32.mxu0 %vm238_vm1, %v3738_v20 }
  0x2b   : > { %3139 = vmatmul.mubr.msk.f32.gmra.mrb[12].mxu1 %vm238_vm1, %v3735_v19  ;;  %3289 = vmatmul.mubr.msk.f32.gmra.mrb[12].mxu0 %vm238_vm1, %v3749_v21 }
  0x2c   : > { %3141 = vmatprep.mubr.msk.f32.mxu1 %vm238_vm1, %v3738_v20  ;;  %3291 = vmatprep.mubr.msk.f32.mxu0 %vm238_vm1, %v3752_v22 }
  0x2f   : > { %3142 = vmatmul.mubr.msk.f32.gmra.mrb[14].mxu1 %vm238_vm1, %v3749_v21  ;;  %3292 = vmatmul.mubr.msk.f32.gmra.mrb[14].mxu0 %vm238_vm1, %v3763_v23 }
  0x30   : > { %3144 = vmatprep.mubr.msk.f32.mxu1 %vm238_vm1, %v3752_v22  ;;  %3294 = vmatprep.mubr.msk.f32.mxu0 %vm238_vm1, %v3766_v24 }
  0x33   : > { %3145 = vmatmul.mubr.msk.f32.gmra.mrb[16].mxu1 %vm238_vm1, %v3763_v23  ;;  %3295 = vmatmul.mubr.msk.f32.gmra.mrb[16].mxu0 %vm238_vm1, %v3777_v25 }
  0x34   : > { %3147 = vmatprep.mubr.msk.f32.mxu1 %vm238_vm1, %v3766_v24  ;;  %3297 = vmatprep.mubr.msk.f32.mxu0 %vm238_vm1, %v3780_v26 }
  0x37   : > { %3148 = vmatmul.mubr.msk.f32.gmra.mrb[18].mxu1 %vm238_vm1, %v3777_v25  ;;  %3298 = vmatmul.mubr.msk.f32.gmra.mrb[18].mxu0 %vm238_vm1, %v3791_v27 }
  0x38   : > { %3150 = vmatprep.mubr.msk.f32.mxu1 %vm238_vm1, %v3780_v26  ;;  %3300 = vmatprep.mubr.msk.f32.mxu0 %vm238_vm1, %v3794_v28 }
  0x3b   : > { %3151 = vmatmul.mubr.msk.f32.gmra.mrb[20].mxu1 %vm238_vm1, %v3791_v27  ;;  %3301 = vmatmul.mubr.msk.f32.gmra.mrb[20].mxu0 %vm238_vm1, %v3805_v29 }
  0x3c   : > { %3153 = vmatprep.mubr.msk.f32.mxu1 %vm238_vm1, %v3794_v28  ;;  %3303 = vmatprep.mubr.msk.f32.mxu0 %vm238_vm1, %v3808_v30 }
  0x3f   : > { %3154 = vmatmul.mubr.msk.f32.gmra.mrb[22].mxu1 %vm238_vm1, %v3805_v29  ;;  %3304 = vmatmul.mubr.msk.f32.gmra.mrb[22].mxu0 %vm238_vm1, %v3819_v31 }
  0x40   : > { %3156 = vmatprep.mubr.msk.f32.mxu1 %vm238_vm1, %v3808_v30  ;;  %3306 = vmatprep.mubr.msk.f32.mxu0 %vm238_vm1, %v3822_v32 }
  0x43   : > { %3157 = vmatmul.mubr.msk.f32.gmra.mrb[24].mxu1 %vm238_vm1, %v3819_v31  ;;  %3307 = vmatmul.mubr.msk.f32.gmra.mrb[24].mxu0 %vm238_vm1, %v3833_v33 }
  0x44   : > { %3159 = vmatprep.mubr.msk.f32.mxu1 %vm238_vm1, %v3822_v32  ;;  %3309 = vmatprep.mubr.msk.f32.mxu0 %vm238_vm1, %v3836_v34 }
  0x47   : > { %3160 = vmatmul.mubr.msk.f32.gmra.mrb[26].mxu1 %vm238_vm1, %v3833_v33  ;;  %3310 = vmatmul.mubr.msk.f32.gmra.mrb[26].mxu0 %vm238_vm1, %v3847_v35 }
  0x48   : > { %3162 = vmatprep.mubr.msk.f32.mxu1 %vm238_vm1, %v3836_v34  ;;  %3312 = vmatprep.mubr.msk.f32.mxu0 %vm238_vm1, %v3850_v36 }
  0x4b   : > { %3163 = vmatmul.mubr.msk.f32.gmra.mrb[28].mxu1 %vm238_vm1, %v3847_v35  ;;  %3313 = vmatmul.mubr.msk.f32.gmra.mrb[28].mxu0 %vm238_vm1, %v3861_v37 }
  0x4c   : > { %3165 = vmatprep.mubr.msk.f32.mxu1 %vm238_vm1, %v3850_v36  ;;  %3315 = vmatprep.mubr.msk.f32.mxu0 %vm238_vm1, %v3864_v38 }
  0x4f   : > { %3166 = vmatmul.mubr.msk.f32.gmra.mrb[30].mxu1 %vm238_vm1, %v3861_v37  ;;  %3316 = vmatmul.mubr.msk.f32.gmra.mrb[30].mxu0 %vm238_vm1, %v3875_v39 }
  0x50   : > { %3170 = vmatprep.mubr.msk.f32.mxu1 %vm238_vm1, %v171_v40  ;;  %3320 = vmatprep.mubr.msk.f32.mxu0 %vm238_vm1, %v3879_v41  ;;  %v2814_v40 = vld [vmem:[%s3647_s25 + $0x198] sm:$0xff] }
  0x53   : > { %3171 = vmatmul.mubr.msk.f32.vlgmr.msra.gmra.mrb[0].mxu1 %vm238_vm1, %v172_v42  ;;  %3321 = vmatmul.mubr.msk.f32.vlgmr.msra.gmra.mrb[0].mxu0 %vm238_vm1, %v3890_v43  ;;  %v2815_v42 = vld [vmem:[%s3647_s25 + $0x1a0] sm:$0xff] }
  0x54   : > { %3219 = vmatpush3.msk.msra.mxu1 %vm335_vm0, %v3663_v9  ;;  %3369 = vmatpush3.msk.msra.mxu0 %vm335_vm0, %v3668_v10  ;;  %v4084_v9 = vld [vmem:[%s3647_s25 + $0x180] sm:$0xff]  ;;  %v4095_v10 = vld [vmem:[%s3647_s25 + $0x188] sm:$0xff] }
  0x55   : > { %3173 = vmatprep.mubr.msk.f32.mxu1 %vm238_vm1, %v3893_v44  ;;  %3323 = vmatprep.mubr.msk.f32.mxu0 %vm238_vm1, %v3896_v45 }
  0x57   : > { %3174 = vmatmul.mubr.msk.f32.gmra.mrb[2].mxu1 %vm238_vm1, %v3906_v46  ;;  %3324 = vmatmul.mubr.msk.f32.gmra.mrb[2].mxu0 %vm238_vm1, %v3909_v47 }
  0x58   : > { %3176 = vmatprep.mubr.msk.f32.mxu1 %vm238_vm1, %v3879_v41  ;;  %3326 = vmatprep.mubr.msk.f32.mxu0 %vm238_vm1, %v3916_v48 }
  0x5b   : > { %3177 = vmatmul.mubr.msk.f32.gmra.mrb[4].mxu1 %vm238_vm1, %v3890_v43  ;;  %3327 = vmatmul.mubr.msk.f32.gmra.mrb[4].mxu0 %vm238_vm1, %v3927_v49 }
  0x5c   : > { %3179 = vmatprep.mubr.msk.f32.mxu1 %vm238_vm1, %v3896_v45  ;;  %3329 = vmatprep.mubr.msk.f32.mxu0 %vm238_vm1, %v3930_v50 }
  0x5f   : > { %3180 = vmatmul.mubr.msk.f32.gmra.mrb[6].mxu1 %vm238_vm1, %v3909_v47  ;;  %3330 = vmatmul.mubr.msk.f32.gmra.mrb[6].mxu0 %vm238_vm1, %v3941_v51 }
  0x60   : > { %3182 = vmatprep.mubr.msk.f32.mxu1 %vm238_vm1, %v3916_v48  ;;  %3332 = vmatprep.mubr.msk.f32.mxu0 %vm238_vm1, %v3944_v52 }
  0x63   : > { %3183 = vmatmul.mubr.msk.f32.gmra.mrb[8].mxu1 %vm238_vm1, %v3927_v49  ;;  %3333 = vmatmul.mubr.msk.f32.gmra.mrb[8].mxu0 %vm238_vm1, %v3955_v53 }
  0x64   : > { %3185 = vmatprep.mubr.msk.f32.mxu1 %vm238_vm1, %v3930_v50  ;;  %3335 = vmatprep.mubr.msk.f32.mxu0 %vm238_vm1, %v3958_v54 }
  0x67   : > { %3186 = vmatmul.mubr.msk.f32.gmra.mrb[10].mxu1 %vm238_vm1, %v3941_v51  ;;  %3336 = vmatmul.mubr.msk.f32.gmra.mrb[10].mxu0 %vm238_vm1, %v3969_v55 }
  0x68   : > { %3188 = vmatprep.mubr.msk.f32.mxu1 %vm238_vm1, %v3944_v52  ;;  %3338 = vmatprep.mubr.msk.f32.mxu0 %vm238_vm1, %v3972_v56 }
  0x6b   : > { %3189 = vmatmul.mubr.msk.f32.gmra.mrb[12].mxu1 %vm238_vm1, %v3955_v53  ;;  %3339 = vmatmul.mubr.msk.f32.gmra.mrb[12].mxu0 %vm238_vm1, %v3983_v57 }
  0x6c   : > { %3191 = vmatprep.mubr.msk.f32.mxu1 %vm238_vm1, %v3958_v54  ;;  %3341 = vmatprep.mubr.msk.f32.mxu0 %vm238_vm1, %v3986_v58 }
  0x6f   : > { %3192 = vmatmul.mubr.msk.f32.gmra.mrb[14].mxu1 %vm238_vm1, %v3969_v55  ;;  %3342 = vmatmul.mubr.msk.f32.gmra.mrb[14].mxu0 %vm238_vm1, %v3997_v59 }
  0x70   : > { %3194 = vmatprep.mubr.msk.f32.mxu1 %vm238_vm1, %v3972_v56  ;;  %3344 = vmatprep.mubr.msk.f32.mxu0 %vm238_vm1, %v4000_v60 }
  0x73   : > { %3195 = vmatmul.mubr.msk.f32.gmra.mrb[16].mxu1 %vm238_vm1, %v3983_v57  ;;  %3345 = vmatmul.mubr.msk.f32.gmra.mrb[16].mxu0 %vm238_vm1, %v4011_v61 }
  0x74   : > { %3197 = vmatprep.mubr.msk.f32.mxu1 %vm238_vm1, %v3986_v58  ;;  %3347 = vmatprep.mubr.msk.f32.mxu0 %vm238_vm1, %v4014_v62 }
  0x77   : > { %3198 = vmatmul.mubr.msk.f32.gmra.mrb[18].mxu1 %vm238_vm1, %v3997_v59  ;;  %3348 = vmatmul.mubr.msk.f32.gmra.mrb[18].mxu0 %vm238_vm1, %v4025_v63 }
  0x78   : > { %3200 = vmatprep.mubr.msk.f32.mxu1 %vm238_vm1, %v4000_v60  ;;  %3350 = vmatprep.mubr.msk.f32.mxu0 %vm238_vm1, %v4028_v0 }
  0x7b   : > { %3201 = vmatmul.mubr.msk.f32.gmra.mrb[20].mxu1 %vm238_vm1, %v4011_v61  ;;  %3351 = vmatmul.mubr.msk.f32.gmra.mrb[20].mxu0 %vm238_vm1, %v4039_v1 }
  0x7c   : > { %3203 = vmatprep.mubr.msk.f32.mxu1 %vm238_vm1, %v4014_v62  ;;  %3353 = vmatprep.mubr.msk.f32.mxu0 %vm238_vm1, %v4042_v2 }
  0x7f   : > { %3204 = vmatmul.mubr.msk.f32.gmra.mrb[22].mxu1 %vm238_vm1, %v4025_v63  ;;  %3354 = vmatmul.mubr.msk.f32.gmra.mrb[22].mxu0 %vm238_vm1, %v4053_v3 }
  0x80   : > { %3206 = vmatprep.mubr.msk.f32.mxu1 %vm238_vm1, %v4028_v0  ;;  %3356 = vmatprep.mubr.msk.f32.mxu0 %vm238_vm1, %v4056_v4 }
  0x83   : > { %3207 = vmatmul.mubr.msk.f32.gmra.mrb[24].mxu1 %vm238_vm1, %v4039_v1  ;;  %3357 = vmatmul.mubr.msk.f32.gmra.mrb[24].mxu0 %vm238_vm1, %v4067_v5 }
  0x84   : > { %3209 = vmatprep.mubr.msk.f32.mxu1 %vm238_vm1, %v4042_v2  ;;  %3359 = vmatprep.mubr.msk.f32.mxu0 %vm238_vm1, %v4070_v6 }
  0x87   : > { %3210 = vmatmul.mubr.msk.f32.gmra.mrb[26].mxu1 %vm238_vm1, %v4053_v3  ;;  %3360 = vmatmul.mubr.msk.f32.gmra.mrb[26].mxu0 %vm238_vm1, %v4081_v7 }
  0x88   : > { %3212 = vmatprep.mubr.msk.f32.mxu1 %vm238_vm1, %v4056_v4  ;;  %3362 = vmatprep.mubr.msk.f32.mxu0 %vm238_vm1, %v4084_v9 }
  0x8b   : > { %3213 = vmatmul.mubr.msk.f32.gmra.mrb[28].mxu1 %vm238_vm1, %v4067_v5  ;;  %3363 = vmatmul.mubr.msk.f32.gmra.mrb[28].mxu0 %vm238_vm1, %v4095_v10 }
  0x8c   : > { %3215 = vmatprep.mubr.msk.f32.mxu1 %vm238_vm1, %v4070_v6  ;;  %3365 = vmatprep.mubr.msk.f32.mxu0 %vm238_vm1, %v2814_v40 }
  0x8f   : > { %3216 = vmatmul.mubr.msk.f32.gmra.mrb[30].mxu1 %vm238_vm1, %v4081_v7  ;;  %3366 = vmatmul.mubr.msk.f32.gmra.mrb[30].mxu0 %vm238_vm1, %v2815_v42 }
  0x90   : > { %3220 = vmatprep.mubr.msk.f32.mxu1 %vm238_vm1, %v3893_v44  ;;  %3370 = vmatprep.mubr.msk.f32.mxu0 %vm238_vm1, %v3656_v8  ;;  %v2880_v8 = vld [vmem:[%s3647_s25 + $0x199] sm:$0xff] }
  0x93   : > { %3221 = vmatmul.mubr.msk.f32.vlgmr.msra.gmra.mrb[0].mxu1 %vm238_vm1, %v3906_v46  ;;  %3371 = vmatmul.mubr.msk.f32.vlgmr.msra.gmra.mrb[0].mxu0 %vm238_vm1, %v3673_v11  ;;  %v2881_v11 = vld [vmem:[%s3647_s25 + $0x1a1] sm:$0xff] }
  0x94   : > { %3223 = vmatprep.mubr.msk.f32.mxu1 %vm238_vm1, %v3879_v41  ;;  %3373 = vmatprep.mubr.msk.f32.mxu0 %vm238_vm1, %v3679_v12 }
  0x97   : > { %3224 = vmatmul.mubr.msk.f32.gmra.mrb[2].mxu1 %vm238_vm1, %v3890_v43  ;;  %3374 = vmatmul.mubr.msk.f32.gmra.mrb[2].mxu0 %vm238_vm1, %v3693_v13 }
  0x98   : > { %3226 = vmatprep.mubr.msk.f32.mxu1 %vm238_vm1, %v3896_v45  ;;  %3376 = vmatprep.mubr.msk.f32.mxu0 %vm238_vm1, %v3696_v14  ;;  %v4241_v14 = vld [vmem:[%s4349_s2] ss:$0 sm:$0xff] }
  0x9b   : > { %3227 = vmatmul.mubr.msk.f32.gmra.mrb[4].mxu1 %vm238_vm1, %v3909_v47  ;;  %3377 = vmatmul.mubr.msk.f32.gmra.mrb[4].mxu0 %vm238_vm1, %v3707_v15 }
  0x9c   : > { %3229 = vmatprep.mubr.msk.f32.mxu1 %vm238_vm1, %v3916_v48  ;;  %3379 = vmatprep.mubr.msk.f32.mxu0 %vm238_vm1, %v3710_v16 }
  0x9f   : > { %3230 = vmatmul.mubr.msk.f32.gmra.mrb[6].mxu1 %vm238_vm1, %v3927_v49  ;;  %3380 = vmatmul.mubr.msk.f32.gmra.mrb[6].mxu0 %vm238_vm1, %v3721_v17 }
  0xa0   : > { %3232 = vmatprep.mubr.msk.f32.mxu1 %vm238_vm1, %v3930_v50  ;;  %3382 = vmatprep.mubr.msk.f32.mxu0 %vm238_vm1, %v3724_v18 }
  0xa3   : > { %3233 = vmatmul.mubr.msk.f32.gmra.mrb[8].mxu1 %vm238_vm1, %v3941_v51  ;;  %3383 = vmatmul.mubr.msk.f32.gmra.mrb[8].mxu0 %vm238_vm1, %v3735_v19 }
  0xa4   : > { %3235 = vmatprep.mubr.msk.f32.mxu1 %vm238_vm1, %v3944_v52  ;;  %3385 = vmatprep.mubr.msk.f32.mxu0 %vm238_vm1, %v3738_v20 }
  0xa7   : > { %3236 = vmatmul.mubr.msk.f32.gmra.mrb[10].mxu1 %vm238_vm1, %v3955_v53  ;;  %3386 = vmatmul.mubr.msk.f32.gmra.mrb[10].mxu0 %vm238_vm1, %v3749_v21 }
  0xa8   : > { %3238 = vmatprep.mubr.msk.f32.mxu1 %vm238_vm1, %v3958_v54  ;;  %3388 = vmatprep.mubr.msk.f32.mxu0 %vm238_vm1, %v3752_v22 }
  0xab   : > { %3239 = vmatmul.mubr.msk.f32.gmra.mrb[12].mxu1 %vm238_vm1, %v3969_v55  ;;  %3389 = vmatmul.mubr.msk.f32.gmra.mrb[12].mxu0 %vm238_vm1, %v3763_v23 }
  0xac   : > { %3241 = vmatprep.mubr.msk.f32.mxu1 %vm238_vm1, %v3972_v56  ;;  %3391 = vmatprep.mubr.msk.f32.mxu0 %vm238_vm1, %v3766_v24 }
  0xaf   : > { %3242 = vmatmul.mubr.msk.f32.gmra.mrb[14].mxu1 %vm238_vm1, %v3983_v57  ;;  %3392 = vmatmul.mubr.msk.f32.gmra.mrb[14].mxu0 %vm238_vm1, %v3777_v25 }
  0xb0   : > { %3244 = vmatprep.mubr.msk.f32.mxu1 %vm238_vm1, %v3986_v58  ;;  %3394 = vmatprep.mubr.msk.f32.mxu0 %vm238_vm1, %v3780_v26 }
  0xb3   : > { %3245 = vmatmul.mubr.msk.f32.gmra.mrb[16].mxu1 %vm238_vm1, %v3997_v59  ;;  %3395 = vmatmul.mubr.msk.f32.gmra.mrb[16].mxu0 %vm238_vm1, %v3791_v27 }
  0xb4   : > { %3247 = vmatprep.mubr.msk.f32.mxu1 %vm238_vm1, %v4000_v60  ;;  %3397 = vmatprep.mubr.msk.f32.mxu0 %vm238_vm1, %v3794_v28 }
  0xb7   : > { %3248 = vmatmul.mubr.msk.f32.gmra.mrb[18].mxu1 %vm238_vm1, %v4011_v61  ;;  %3398 = vmatmul.mubr.msk.f32.gmra.mrb[18].mxu0 %vm238_vm1, %v3805_v29 }
  0xb8   : > { %3250 = vmatprep.mubr.msk.f32.mxu1 %vm238_vm1, %v4014_v62  ;;  %3400 = vmatprep.mubr.msk.f32.mxu0 %vm238_vm1, %v3808_v30 }
  0xbb   : > { %3251 = vmatmul.mubr.msk.f32.gmra.mrb[20].mxu1 %vm238_vm1, %v4025_v63  ;;  %3401 = vmatmul.mubr.msk.f32.gmra.mrb[20].mxu0 %vm238_vm1, %v3819_v31 }
  0xbc   : > { %3253 = vmatprep.mubr.msk.f32.mxu1 %vm238_vm1, %v4028_v0  ;;  %3403 = vmatprep.mubr.msk.f32.mxu0 %vm238_vm1, %v3822_v32 }
  0xbf   : > { %3254 = vmatmul.mubr.msk.f32.gmra.mrb[22].mxu1 %vm238_vm1, %v4039_v1  ;;  %3404 = vmatmul.mubr.msk.f32.gmra.mrb[22].mxu0 %vm238_vm1, %v3833_v33 }
  0xc0   : > { %3256 = vmatprep.mubr.msk.f32.mxu1 %vm238_vm1, %v4042_v2  ;;  %3406 = vmatprep.mubr.msk.f32.mxu0 %vm238_vm1, %v3836_v34 }
  0xc3   : > { %3257 = vmatmul.mubr.msk.f32.gmra.mrb[24].mxu1 %vm238_vm1, %v4053_v3  ;;  %3407 = vmatmul.mubr.msk.f32.gmra.mrb[24].mxu0 %vm238_vm1, %v3847_v35 }
  0xc4   : > { %3259 = vmatprep.mubr.msk.f32.mxu1 %vm238_vm1, %v4056_v4  ;;  %3409 = vmatprep.mubr.msk.f32.mxu0 %vm238_vm1, %v3850_v36 }
  0xc7   : > { %3260 = vmatmul.mubr.msk.f32.gmra.mrb[26].mxu1 %vm238_vm1, %v4067_v5  ;;  %3410 = vmatmul.mubr.msk.f32.gmra.mrb[26].mxu0 %vm238_vm1, %v3861_v37 }
  0xc8   : > { %3262 = vmatprep.mubr.msk.f32.mxu1 %vm238_vm1, %v4070_v6  ;;  %3412 = vmatprep.mubr.msk.f32.mxu0 %vm238_vm1, %v3864_v38 }
  0xcb   : > { %3263 = vmatmul.mubr.msk.f32.gmra.mrb[28].mxu1 %vm238_vm1, %v4081_v7  ;;  %3413 = vmatmul.mubr.msk.f32.gmra.mrb[28].mxu0 %vm238_vm1, %v3875_v39 }
  0xcc   : > { %3265 = vmatprep.mubr.msk.f32.mxu1 %vm238_vm1, %v4084_v9  ;;  %3415 = vmatprep.mubr.msk.f32.mxu0 %vm238_vm1, %v2880_v8 }
  0xcf   : > { %3266 = vmatmul.mubr.msk.f32.gmra.mrb[30].mxu1 %vm238_vm1, %v4095_v10  ;;  %3416 = vmatmul.mubr.msk.f32.gmra.mrb[30].mxu0 %vm238_vm1, %v2881_v11 }
 0x166   : > { %v3222_v12 = vpop.f32.mrb[0].mxu1  ;;  %v3372_v13 = vpop.f32.mrb[0].mxu0 }
 0x167   : > { %v3418_v15 = vadd.f32 %v3372_v13, %v3222_v12  ;;  %v1088_v16 = vpop.f32.mrb[1].mxu1  ;;  %v2259_v17 = vpop.f32.mrb[1].mxu0 }
 0x168   : > { %v3419_v18 = vadd.f32 %v2259_v17, %v1088_v16 }
 0x169   : > { %v2458_v19 = vadd.f32 %v3418_v15, %v4241_v14 }
 0x16a   : > { %v2457_v20 = vadd.f32 %v3419_v18, %v4241_v14  ;;  %v3225_v21 = vpop.f32.mrb[2].mxu1  ;;  %v3375_v22 = vpop.f32.mrb[2].mxu0 }
 0x16b   : > { %2491 = vst.msk [vmem:[%s4246_s8 + $0x8] sm:$0xff] %vm2489_vm2, %v2458_v19  ;;  %v3420_v23 = vadd.f32 %v3375_v22, %v3225_v21  ;;  %v1098_v24 = vpop.f32.mrb[3].mxu1  ;;  %v2269_v25 = vpop.f32.mrb[3].mxu0 }
 0x16c   : > { %2490 = vst.msk [vmem:[%s4246_s8] sm:$0xff] %vm2489_vm2, %v2457_v20  ;;  %v3421_v26 = vadd.f32 %v2269_v25, %v1098_v24 }
 0x16d   : > { %v2460_v27 = vadd.f32 %v3420_v23, %v4241_v14 }
 0x16e   : > { %v2459_v28 = vadd.f32 %v3421_v26, %v4241_v14  ;;  %v3228_v29 = vpop.f32.mrb[4].mxu1  ;;  %v3378_v30 = vpop.f32.mrb[4].mxu0 }
 0x16f   : > { %2493 = vst.msk [vmem:[%s4246_s8 + $0x18] sm:$0xff] %vm2489_vm2, %v2460_v27  ;;  %v3422_v31 = vadd.f32 %v3378_v30, %v3228_v29  ;;  %v1108_v32 = vpop.f32.mrb[5].mxu1  ;;  %v2279_v33 = vpop.f32.mrb[5].mxu0 }
 0x170   : > { %2492 = vst.msk [vmem:[%s4246_s8 + $0x10] sm:$0xff] %vm2489_vm2, %v2459_v28  ;;  %v3423_v34 = vadd.f32 %v2279_v33, %v1108_v32 }
 0x171   : > { %v2462_v35 = vadd.f32 %v3422_v31, %v4241_v14 }
 0x172   : > { %v2461_v36 = vadd.f32 %v3423_v34, %v4241_v14  ;;  %v3231_v37 = vpop.f32.mrb[6].mxu1  ;;  %v3381_v38 = vpop.f32.mrb[6].mxu0 }
 0x173   : > { %2495 = vst.msk [vmem:[%s4246_s8 + $0x28] sm:$0xff] %vm2489_vm2, %v2462_v35  ;;  %v3424_v39 = vadd.f32 %v3381_v38, %v3231_v37  ;;  %v1118_v41 = vpop.f32.mrb[7].mxu1  ;;  %v2289_v43 = vpop.f32.mrb[7].mxu0 }
 0x174   : > { %2494 = vst.msk [vmem:[%s4246_s8 + $0x20] sm:$0xff] %vm2489_vm2, %v2461_v36  ;;  %v3425_v44 = vadd.f32 %v2289_v43, %v1118_v41 }
 0x175   : > { %v2464_v45 = vadd.f32 %v3424_v39, %v4241_v14 }
 0x176   : > { %v2463_v46 = vadd.f32 %v3425_v44, %v4241_v14  ;;  %v3234_v47 = vpop.f32.mrb[8].mxu1  ;;  %v3384_v48 = vpop.f32.mrb[8].mxu0 }
 0x177   : > { %2497 = vst.msk [vmem:[%s4246_s8 + $0x38] sm:$0xff] %vm2489_vm2, %v2464_v45  ;;  %v3426_v49 = vadd.f32 %v3384_v48, %v3234_v47  ;;  %v1128_v50 = vpop.f32.mrb[9].mxu1  ;;  %v2299_v51 = vpop.f32.mrb[9].mxu0 }
 0x178   : > { %2496 = vst.msk [vmem:[%s4246_s8 + $0x30] sm:$0xff] %vm2489_vm2, %v2463_v46  ;;  %v3427_v52 = vadd.f32 %v2299_v51, %v1128_v50 }
 0x179   : > { %v2466_v53 = vadd.f32 %v3426_v49, %v4241_v14 }
 0x17a   : > { %v2465_v54 = vadd.f32 %v3427_v52, %v4241_v14  ;;  %v3237_v55 = vpop.f32.mrb[10].mxu1  ;;  %v3387_v56 = vpop.f32.mrb[10].mxu0 }
 0x17b   : > { %2499 = vst.msk [vmem:[%s4246_s8 + $0x48] sm:$0xff] %vm2489_vm2, %v2466_v53  ;;  %v3428_v57 = vadd.f32 %v3387_v56, %v3237_v55  ;;  %v1138_v58 = vpop.f32.mrb[11].mxu1  ;;  %v2309_v59 = vpop.f32.mrb[11].mxu0 }
 0x17c   : > { %2498 = vst.msk [vmem:[%s4246_s8 + $0x40] sm:$0xff] %vm2489_vm2, %v2465_v54  ;;  %v3429_v60 = vadd.f32 %v2309_v59, %v1138_v58 }
 0x17d   : > { %v2468_v61 = vadd.f32 %v3428_v57, %v4241_v14 }
 0x17e   : > { %v2467_v62 = vadd.f32 %v3429_v60, %v4241_v14  ;;  %v3240_v63 = vpop.f32.mrb[12].mxu1  ;;  %v3390_v0 = vpop.f32.mrb[12].mxu0 }
 0x17f   : > { %2501 = vst.msk [vmem:[%s4246_s8 + $0x58] sm:$0xff] %vm2489_vm2, %v2468_v61  ;;  %v3430_v1 = vadd.f32 %v3390_v0, %v3240_v63  ;;  %v1148_v2 = vpop.f32.mrb[13].mxu1  ;;  %v2319_v3 = vpop.f32.mrb[13].mxu0 }
 0x180   : > { %2500 = vst.msk [vmem:[%s4246_s8 + $0x50] sm:$0xff] %vm2489_vm2, %v2467_v62  ;;  %v3431_v4 = vadd.f32 %v2319_v3, %v1148_v2 }
 0x181   : > { %v2470_v5 = vadd.f32 %v3430_v1, %v4241_v14 }
 0x182   : > { %v2469_v6 = vadd.f32 %v3431_v4, %v4241_v14  ;;  %v3243_v7 = vpop.f32.mrb[14].mxu1  ;;  %v3393_v9 = vpop.f32.mrb[14].mxu0 }
 0x183   : > { %2503 = vst.msk [vmem:[%s4246_s8 + $0x68] sm:$0xff] %vm2489_vm2, %v2470_v5  ;;  %v3432_v10 = vadd.f32 %v3393_v9, %v3243_v7  ;;  %v1158_v40 = vpop.f32.mrb[15].mxu1  ;;  %v2329_v42 = vpop.f32.mrb[15].mxu0 }
 0x184   : > { %2502 = vst.msk [vmem:[%s4246_s8 + $0x60] sm:$0xff] %vm2489_vm2, %v2469_v6  ;;  %v3433_v8 = vadd.f32 %v2329_v42, %v1158_v40 }
 0x185   : > { %v2472_v11 = vadd.f32 %v3432_v10, %v4241_v14 }
 0x186   : > { %v2471_v12 = vadd.f32 %v3433_v8, %v4241_v14  ;;  %v3246_v13 = vpop.f32.mrb[16].mxu1  ;;  %v3396_v15 = vpop.f32.mrb[16].mxu0 }
 0x187   : > { %2505 = vst.msk [vmem:[%s4246_s8 + $0x78] sm:$0xff] %vm2489_vm2, %v2472_v11  ;;  %v3434_v16 = vadd.f32 %v3396_v15, %v3246_v13  ;;  %v1168_v17 = vpop.f32.mrb[17].mxu1  ;;  %v2339_v18 = vpop.f32.mrb[17].mxu0 }
 0x188   : > { %2504 = vst.msk [vmem:[%s4246_s8 + $0x70] sm:$0xff] %vm2489_vm2, %v2471_v12  ;;  %v3435_v19 = vadd.f32 %v2339_v18, %v1168_v17 }
 0x189   : > { %v2474_v20 = vadd.f32 %v3434_v16, %v4241_v14 }
 0x18a   : > { %v2473_v21 = vadd.f32 %v3435_v19, %v4241_v14  ;;  %v3249_v22 = vpop.f32.mrb[18].mxu1  ;;  %v3399_v23 = vpop.f32.mrb[18].mxu0 }
 0x18b   : > { %2507 = vst.msk [vmem:[%s4246_s8 + $0x88] sm:$0xff] %vm2489_vm2, %v2474_v20  ;;  %v3436_v24 = vadd.f32 %v3399_v23, %v3249_v22  ;;  %v1178_v25 = vpop.f32.mrb[19].mxu1  ;;  %v2349_v26 = vpop.f32.mrb[19].mxu0 }
 0x18c   : > { %2506 = vst.msk [vmem:[%s4246_s8 + $0x80] sm:$0xff] %vm2489_vm2, %v2473_v21  ;;  %v3437_v27 = vadd.f32 %v2349_v26, %v1178_v25 }
 0x18d   : > { %v2476_v28 = vadd.f32 %v3436_v24, %v4241_v14 }
 0x18e   : > { %v2475_v29 = vadd.f32 %v3437_v27, %v4241_v14  ;;  %v3252_v30 = vpop.f32.mrb[20].mxu1  ;;  %v3402_v31 = vpop.f32.mrb[20].mxu0 }
 0x18f   : > { %2509 = vst.msk [vmem:[%s4246_s8 + $0x98] sm:$0xff] %vm2489_vm2, %v2476_v28  ;;  %v3438_v32 = vadd.f32 %v3402_v31, %v3252_v30  ;;  %v1188_v33 = vpop.f32.mrb[21].mxu1  ;;  %v2359_v34 = vpop.f32.mrb[21].mxu0 }
 0x190   : > { %2508 = vst.msk [vmem:[%s4246_s8 + $0x90] sm:$0xff] %vm2489_vm2, %v2475_v29  ;;  %v3439_v35 = vadd.f32 %v2359_v34, %v1188_v33 }
 0x191   : > { %v2478_v36 = vadd.f32 %v3438_v32, %v4241_v14 }
 0x192   : > { %v2477_v37 = vadd.f32 %v3439_v35, %v4241_v14  ;;  %v3255_v38 = vpop.f32.mrb[22].mxu1  ;;  %v3405_v39 = vpop.f32.mrb[22].mxu0 }
 0x193   : > { %2511 = vst.msk [vmem:[%s4246_s8 + $0xa8] sm:$0xff] %vm2489_vm2, %v2478_v36  ;;  %v3440_v41 = vadd.f32 %v3405_v39, %v3255_v38  ;;  %v1198_v43 = vpop.f32.mrb[23].mxu1  ;;  %v2369_v44 = vpop.f32.mrb[23].mxu0 }
 0x194   : > { %2510 = vst.msk [vmem:[%s4246_s8 + $0xa0] sm:$0xff] %vm2489_vm2, %v2477_v37  ;;  %v3441_v45 = vadd.f32 %v2369_v44, %v1198_v43 }
 0x195   : > { %v2480_v46 = vadd.f32 %v3440_v41, %v4241_v14 }
 0x196   : > { %v2479_v47 = vadd.f32 %v3441_v45, %v4241_v14  ;;  %v3258_v48 = vpop.f32.mrb[24].mxu1  ;;  %v3408_v49 = vpop.f32.mrb[24].mxu0 }
 0x197   : > { %2513 = vst.msk [vmem:[%s4246_s8 + $0xb8] sm:$0xff] %vm2489_vm2, %v2480_v46  ;;  %v3442_v50 = vadd.f32 %v3408_v49, %v3258_v48  ;;  %v1208_v51 = vpop.f32.mrb[25].mxu1  ;;  %v2379_v52 = vpop.f32.mrb[25].mxu0 }
 0x198   : > { %2512 = vst.msk [vmem:[%s4246_s8 + $0xb0] sm:$0xff] %vm2489_vm2, %v2479_v47  ;;  %v3443_v53 = vadd.f32 %v2379_v52, %v1208_v51 }
 0x199   : > { %v2482_v54 = vadd.f32 %v3442_v50, %v4241_v14 }
 0x19a   : > { %v2481_v55 = vadd.f32 %v3443_v53, %v4241_v14  ;;  %v3261_v56 = vpop.f32.mrb[26].mxu1  ;;  %v3411_v57 = vpop.f32.mrb[26].mxu0 }
 0x19b   : > { %2515 = vst.msk [vmem:[%s4246_s8 + $0xc8] sm:$0xff] %vm2489_vm2, %v2482_v54  ;;  %v3444_v58 = vadd.f32 %v3411_v57, %v3261_v56  ;;  %v1218_v59 = vpop.f32.mrb[27].mxu1  ;;  %v2389_v60 = vpop.f32.mrb[27].mxu0 }
 0x19c   : > { %2514 = vst.msk [vmem:[%s4246_s8 + $0xc0] sm:$0xff] %vm2489_vm2, %v2481_v55  ;;  %v3445_v61 = vadd.f32 %v2389_v60, %v1218_v59 }
 0x19d   : > { %v2484_v62 = vadd.f32 %v3444_v58, %v4241_v14 }
 0x19e   : > { %v2483_v63 = vadd.f32 %v3445_v61, %v4241_v14  ;;  %v3264_v0 = vpop.f32.mrb[28].mxu1  ;;  %v3414_v1 = vpop.f32.mrb[28].mxu0 }
 0x19f   : > { %2517 = vst.msk [vmem:[%s4246_s8 + $0xd8] sm:$0xff] %vm2489_vm2, %v2484_v62  ;;  %v3446_v2 = vadd.f32 %v3414_v1, %v3264_v0  ;;  %v1228_v3 = vpop.f32.mrb[29].mxu1  ;;  %v2399_v4 = vpop.f32.mrb[29].mxu0 }
 0x1a0   : > { %2516 = vst.msk [vmem:[%s4246_s8 + $0xd0] sm:$0xff] %vm2489_vm2, %v2483_v63  ;;  %v3447_v5 = vadd.f32 %v2399_v4, %v1228_v3 }
 0x1a1   : > { %v2486_v6 = vadd.f32 %v3446_v2, %v4241_v14 }
 0x1a2   : > { %v2485_v7 = vadd.f32 %v3447_v5, %v4241_v14  ;;  %v3267_v9 = vpop.f32.mrb[30].mxu1  ;;  %v3417_v10 = vpop.f32.mrb[30].mxu0 }
 0x1a3   : > { %2519 = vst.msk [vmem:[%s4246_s8 + $0xe8] sm:$0xff] %vm2489_vm2, %v2486_v6  ;;  %v3448_v40 = vadd.f32 %v3417_v10, %v3267_v9  ;;  %v1238_v42 = vpop.f32.mrb[31].mxu1  ;;  %v2409_v8 = vpop.f32.mrb[31].mxu0 }
 0x1a4   : > { %2518 = vst.msk [vmem:[%s4246_s8 + $0xe0] sm:$0xff] %vm2489_vm2, %v2485_v7  ;;  %v3449_v11 = vadd.f32 %v2409_v8, %v1238_v42 }
 0x1a5   : > { %v2488_v12 = vadd.f32 %v3448_v40, %v4241_v14 }
 0x1a6   : > { %v2487_v13 = vadd.f32 %v3449_v11, %v4241_v14 }
 0x1a7   : > { %2521 = vst.msk [vmem:[%s4246_s8 + $0xf8] sm:$0xff] %vm2489_vm2, %v2488_v12 }
 0x1a8   : > { %2520 = vst.msk [vmem:[%s4246_s8 + $0xf0] sm:$0xff] %vm2489_vm2, %v2487_v13 }
 0x1a9 PF: > { %s13_s12 = sadd.s32 1, %s3593_s12  }
 0x1aa   : > { %p10_p4 = scmp.ge.s32.totalorder %s13_s12, 4  }
 0x1ac   :  { %12 = sbr.rel (!%p10_p4) target bundleno = 1 (0x1), region = 69 }

</bundles_post_ra>
